<compile_context>
chip_gen: v5e
topology: v5e:2x2
jax: 0.10.0
libtpu: 0.0.40
codegen_flags: <defaults>
</compile_context>

<pallas_src>
import jax
import jax.numpy as jnp
from jax.experimental import pallas as pl
from jax.experimental.pallas import tpu as pltpu


def soft_q_kernel(s_ref, a_ref, w1s_ref, w1a_ref, b1_ref, w2_ref, b2_ref,
                  w3_ref, b3_ref, out_ref):
    # Activations arrive in f32; cast MXU operands to bf16, accumulate in f32.
    s = s_ref[...].astype(jnp.bfloat16)            # (TB, num_inputs)
    a = a_ref[...].astype(jnp.bfloat16)            # (TB, num_actions)

    # ---- linear1 + ReLU (input concat fused as a split matmul) ----
    h1 = jnp.dot(s, w1s_ref[...], preferred_element_type=jnp.float32)
    h1 = h1 + jnp.dot(a, w1a_ref[...], preferred_element_type=jnp.float32)
    h1 = jnp.maximum(h1 + b1_ref[...], 0.0)        # bias/ReLU in f32

    # ---- linear2 + ReLU ----
    h2 = jnp.dot(h1.astype(jnp.bfloat16), w2_ref[...],
                 preferred_element_type=jnp.float32)
    h2 = jnp.maximum(h2 + b2_ref[...], 0.0)

    # ---- linear3: single output unit -> VPU multiply + reductions (no MXU) ----
    # Per-row Q values (row sums of h2 * w3_row).
    q_col = jnp.sum(h2 * w3_ref[...], axis=-1, keepdims=True)      # (TB, 1) f32

    # Relayout the (TB, 1) column into a lane-major (1, TB) row using only
    # plain VPU/XLU ops (broadcast + iota mask + sublane reduction), instead of
    # relying on transpose/reshape lowering of a degenerate-shaped vector.
    tb = q_col.shape[0]
    row_ids = jax.lax.broadcasted_iota(jnp.int32, (tb, tb), 0)
    col_ids = jax.lax.broadcasted_iota(jnp.int32, (tb, tb), 1)
    diag = jnp.where(row_ids == col_ids,
                     jnp.broadcast_to(q_col, (tb, tb)), 0.0)
    q_row = jnp.sum(diag, axis=0, keepdims=True)                    # (1, TB)

    # Scalar bias from SMEM; lane-dense (unmasked) store, batch on the lane axis.
    out_ref[...] = (q_row + b3_ref[0, 0]).astype(out_ref.dtype)


def soft_q_forward(state, action, params, *, max_block_rows=256):
    """Pallas-backed SoftQNetwork forward.

    state:  (B, num_inputs)  float32
    action: (B, num_actions) float32
    params: dict with w1s (ni,H) bf16, w1a (na,H) bf16, b1 (1,H) f32,
            w2 (H,H) bf16, b2 (1,H) f32, w3 (1,H) f32, b3 (1,1) f32
    returns (B, 1) float32 Q-values.
    """
    B, num_inputs = state.shape
    num_actions = action.shape[1]

    # Single block at small B; tile the ("parallel") batch axis when B is large.
    tb = B if B <= max_block_rows else max_block_rows
    grid = (pl.cdiv(B, tb),)

    w1s, w1a = params["w1s"], params["w1a"]
    b1, w2, b2 = params["b1"], params["w2"], params["b2"]
    w3, b3 = params["w3"], params["b3"]

    def resident(arr):
        # Weights/biases: same block every grid step -> stay resident in VMEM.
        return pl.BlockSpec(arr.shape, lambda i, _nd=arr.ndim: (0,) * _nd)

    out = pl.pallas_call(
        soft_q_kernel,
        out_shape=jax.ShapeDtypeStruct((1, B), jnp.float32),
        grid=grid,
        in_specs=[
            pl.BlockSpec((tb, num_inputs), lambda i: (i, 0)),    # state rows
            pl.BlockSpec((tb, num_actions), lambda i: (i, 0)),   # action rows
            resident(w1s), resident(w1a), resident(b1),
            resident(w2), resident(b2), resident(w3),
            pl.BlockSpec(memory_space=pltpu.MemorySpace.SMEM),   # b3 scalar
        ],
        out_specs=pl.BlockSpec((1, tb), lambda i: (0, i)),       # lane-dense
        compiler_params=pltpu.CompilerParams(
            dimension_semantics=("parallel",)),
    )(state, action, w1s, w1a, b1, w2, b2, w3, b3)

    # (1, B) and (B, 1) share the same row-major data; reshape is ~free.
    return out.reshape(B, 1)


def init_soft_q_params(key, num_inputs, num_actions, hidden_size, init_w=0.003):
    """uniform(-init_w, init_w) init mirroring the PyTorch __init__.

    Weights are stored pre-transposed as (in, out), the first layer pre-split
    (state part / action part) so the kernel never needs the concatenated
    input, and MXU weights kept in bfloat16. w3 keeps PyTorch's (1, H) layout.
    """
    ks = jax.random.split(key, 6)
    u = lambda k, shape: jax.random.uniform(
        k, shape, minval=-init_w, maxval=init_w, dtype=jnp.float32)
    w1 = u(ks[0], (num_inputs + num_actions, hidden_size))
    return {
        "w1s": w1[:num_inputs].astype(jnp.bfloat16),
        "w1a": w1[num_inputs:].astype(jnp.bfloat16),
        "b1": u(ks[1], (1, hidden_size)),
        "w2": u(ks[2], (hidden_size, hidden_size)).astype(jnp.bfloat16),
        "b2": u(ks[3], (1, hidden_size)),
        "w3": u(ks[4], (1, hidden_size)),   # VPU weight row, kept f32
        "b3": u(ks[5], (1, 1)),
    }


if __name__ == "__main__":
    num_inputs, num_actions, hidden_size = 24, 8, 32
    batch = 8

    key = jax.random.PRNGKey(0)
    k_params, k_state, k_action = jax.random.split(key, 3)

    params = init_soft_q_params(k_params, num_inputs, num_actions, hidden_size)
    state = jax.random.normal(k_state, (batch, num_inputs), dtype=jnp.float32)
    action = jax.random.normal(k_action, (batch, num_actions), dtype=jnp.float32)

    q = jax.jit(soft_q_forward)(state, action, params)
    jax.block_until_ready(q)

    # Pure-JAX reference: same math as the PyTorch forward, using the same
    # parameters (bf16 weights upcast to f32).
    f32 = lambda t: t.astype(jnp.float32)
    x = jnp.concatenate([state, action], axis=1)
    w1 = jnp.concatenate([f32(params["w1s"]), f32(params["w1a"])], axis=0)
    h1 = jnp.maximum(x @ w1 + params["b1"], 0.0)
    h2 = jnp.maximum(h1 @ f32(params["w2"]) + params["b2"], 0.0)
    q_ref = h2 @ params["w3"].T + params["b3"]

    assert q.shape == (batch, 1)
    assert jnp.allclose(q, q_ref, atol=1e-5, rtol=1e-2), (
        f"max abs diff = {float(jnp.max(jnp.abs(q - q_ref)))}")

    print("KERNEL_OK")
</pallas_src>

<mosaic_0001>
module attributes {stable_mosaic.version = 11 : i64} {
  func.func @soft_q_kernel(%arg0: i32, %arg1: memref<8x24xf32, #tpu.memory_space<vmem>>, %arg2: memref<8x8xf32, #tpu.memory_space<vmem>>, %arg3: memref<24x32xbf16, #tpu.memory_space<vmem>>, %arg4: memref<8x32xbf16, #tpu.memory_space<vmem>>, %arg5: memref<1x32xf32, #tpu.memory_space<vmem>>, %arg6: memref<32x32xbf16, #tpu.memory_space<vmem>>, %arg7: memref<1x32xf32, #tpu.memory_space<vmem>>, %arg8: memref<1x32xf32, #tpu.memory_space<vmem>>, %arg9: memref<1x1xf32, #tpu.memory_space<smem>>, %arg10: memref<1x8xf32, #tpu.memory_space<vmem>>) attributes {dimension_semantics = [#tpu.dimension_semantics<parallel>], iteration_bounds = array<i64: 1>, scalar_prefetch = 0 : i64, scratch_operands = 0 : i64, tpu.core_type = #tpu.core_type<tc>, window_params = [{transform_indices = @transform_0, window_bounds = array<i64: 8, 24>}, {transform_indices = @transform_1, window_bounds = array<i64: 8, 8>}, {pipeline_mode = #tpu.pipeline_mode<synchronous>, transform_indices = @transform_2, window_bounds = array<i64: 24, 32>}, {pipeline_mode = #tpu.pipeline_mode<synchronous>, transform_indices = @transform_3, window_bounds = array<i64: 8, 32>}, {pipeline_mode = #tpu.pipeline_mode<synchronous>, transform_indices = @transform_4, window_bounds = array<i64: 1, 32>}, {pipeline_mode = #tpu.pipeline_mode<synchronous>, transform_indices = @transform_5, window_bounds = array<i64: 32, 32>}, {pipeline_mode = #tpu.pipeline_mode<synchronous>, transform_indices = @transform_6, window_bounds = array<i64: 1, 32>}, {pipeline_mode = #tpu.pipeline_mode<synchronous>, transform_indices = @transform_7, window_bounds = array<i64: 1, 32>}, {transform_indices = @transform_8, window_bounds = array<i64: 1, 1>}, {transform_indices = @transform_9, window_bounds = array<i64: 1, 8>}]} {
    %c0 = arith.constant 0 : index
    %c0_0 = arith.constant 0 : index
    %0 = vector.load %arg1[%c0, %c0_0] : memref<8x24xf32, #tpu.memory_space<vmem>>, vector<8x24xf32>
    %1 = arith.truncf %0 : vector<8x24xf32> to vector<8x24xbf16>
    %c0_1 = arith.constant 0 : index
    %c0_2 = arith.constant 0 : index
    %2 = vector.load %arg2[%c0_1, %c0_2] : memref<8x8xf32, #tpu.memory_space<vmem>>, vector<8x8xf32>
    %3 = arith.truncf %2 : vector<8x8xf32> to vector<8x8xbf16>
    %c0_3 = arith.constant 0 : index
    %c0_4 = arith.constant 0 : index
    %4 = vector.load %arg3[%c0_3, %c0_4] : memref<24x32xbf16, #tpu.memory_space<vmem>>, vector<24x32xbf16>
    %cst = arith.constant dense<0.000000e+00> : vector<8x32xf32>
    %5 = tpu.matmul %1, %4, %cst {dimension_numbers = #tpu.dot_dimension_numbers<[1], [0], [0], [1], [0, 0, 1, 1], [], []>} : vector<8x24xbf16>, vector<24x32xbf16>, vector<8x32xf32> -> vector<8x32xf32>
    %c0_5 = arith.constant 0 : index
    %c0_6 = arith.constant 0 : index
    %6 = vector.load %arg4[%c0_5, %c0_6] : memref<8x32xbf16, #tpu.memory_space<vmem>>, vector<8x32xbf16>
    %cst_7 = arith.constant dense<0.000000e+00> : vector<8x32xf32>
    %7 = tpu.matmul %3, %6, %cst_7 {dimension_numbers = #tpu.dot_dimension_numbers<[1], [0], [0], [1], [0, 0, 1, 1], [], []>} : vector<8x8xbf16>, vector<8x32xbf16>, vector<8x32xf32> -> vector<8x32xf32>
    %8 = arith.addf %5, %7 : vector<8x32xf32>
    %c0_8 = arith.constant 0 : index
    %c0_9 = arith.constant 0 : index
    %9 = vector.load %arg5[%c0_8, %c0_9] : memref<1x32xf32, #tpu.memory_space<vmem>>, vector<1x32xf32>
    %10 = vector.broadcast %9 : vector<1x32xf32> to vector<8x32xf32>
    %11 = arith.addf %8, %10 : vector<8x32xf32>
    %cst_10 = arith.constant 0.000000e+00 : f32
    %12 = vector.broadcast %cst_10 : f32 to vector<8x32xf32>
    %13 = arith.maximumf %11, %12 : vector<8x32xf32>
    %14 = arith.truncf %13 : vector<8x32xf32> to vector<8x32xbf16>
    %c0_11 = arith.constant 0 : index
    %c0_12 = arith.constant 0 : index
    %15 = vector.load %arg6[%c0_11, %c0_12] : memref<32x32xbf16, #tpu.memory_space<vmem>>, vector<32x32xbf16>
    %cst_13 = arith.constant dense<0.000000e+00> : vector<8x32xf32>
    %16 = tpu.matmul %14, %15, %cst_13 {dimension_numbers = #tpu.dot_dimension_numbers<[1], [0], [0], [1], [0, 0, 1, 1], [], []>} : vector<8x32xbf16>, vector<32x32xbf16>, vector<8x32xf32> -> vector<8x32xf32>
    %c0_14 = arith.constant 0 : index
    %c0_15 = arith.constant 0 : index
    %17 = vector.load %arg7[%c0_14, %c0_15] : memref<1x32xf32, #tpu.memory_space<vmem>>, vector<1x32xf32>
    %18 = vector.broadcast %17 : vector<1x32xf32> to vector<8x32xf32>
    %19 = arith.addf %16, %18 : vector<8x32xf32>
    %cst_16 = arith.constant 0.000000e+00 : f32
    %20 = vector.broadcast %cst_16 : f32 to vector<8x32xf32>
    %21 = arith.maximumf %19, %20 : vector<8x32xf32>
    %c0_17 = arith.constant 0 : index
    %c0_18 = arith.constant 0 : index
    %22 = vector.load %arg8[%c0_17, %c0_18] : memref<1x32xf32, #tpu.memory_space<vmem>>, vector<1x32xf32>
    %23 = vector.broadcast %22 : vector<1x32xf32> to vector<8x32xf32>
    %24 = arith.mulf %21, %23 : vector<8x32xf32>
    %cst_19 = arith.constant dense<0.000000e+00> : vector<8xf32>
    %25 = vector.multi_reduction <add>, %24, %cst_19 [1] : vector<8x32xf32> to vector<8xf32>
    %26 = vector.shape_cast %25 : vector<8xf32> to vector<8x1xf32>
    %27 = tpu.iota {dimensions = array<i32: 0>} : vector<8x8xi32>
    %28 = tpu.iota {dimensions = array<i32: 1>} : vector<8x8xi32>
    %29 = arith.cmpi eq, %27, %28 : vector<8x8xi32>
    %30 = vector.shape_cast %26 : vector<8x1xf32> to vector<8x1xf32>
    %31 = vector.broadcast %30 : vector<8x1xf32> to vector<8x8xf32>
    %cst_20 = arith.constant 0.000000e+00 : f32
    %32 = vector.broadcast %cst_20 : f32 to vector<8x8xf32>
    %33 = arith.select %29, %31, %32 : vector<8x8xi1>, vector<8x8xf32>
    %cst_21 = arith.constant dense<0.000000e+00> : vector<8xf32>
    %34 = vector.multi_reduction <add>, %33, %cst_21 [0] : vector<8x8xf32> to vector<8xf32>
    %35 = vector.shape_cast %34 : vector<8xf32> to vector<1x8xf32>
    %c0_22 = arith.constant 0 : index
    %c0_23 = arith.constant 0 : index
    %36 = memref.load %arg9[%c0_22, %c0_23] : memref<1x1xf32, #tpu.memory_space<smem>>
    %37 = vector.broadcast %36 : f32 to vector<1x8xf32>
    %38 = arith.addf %35, %37 : vector<1x8xf32>
    %c0_24 = arith.constant 0 : index
    %c0_25 = arith.constant 0 : index
    %39 = vector.load %arg10[%c0_24, %c0_25] : memref<1x8xf32, #tpu.memory_space<vmem>>, vector<1x8xf32>
    tpu.vector_store %arg10[%c0_24, %c0_25], %38 {strides = array<i32>} : memref<1x8xf32, #tpu.memory_space<vmem>>, vector<1x8xf32>,
    return
  }
  func.func @transform_0(%arg0: i32) -> (i32, i32) {
    %c0_i32 = arith.constant 0 : i32
    %c0_i32_0 = arith.constant 0 : i32
    return %arg0, %c0_i32 : i32, i32
  }
  func.func @transform_1(%arg0: i32) -> (i32, i32) {
    %c0_i32 = arith.constant 0 : i32
    %c0_i32_0 = arith.constant 0 : i32
    return %arg0, %c0_i32 : i32, i32
  }
  func.func @transform_2(%arg0: i32) -> (i32, i32) {
    %c0_i32 = arith.constant 0 : i32
    %c0_i32_0 = arith.constant 0 : i32
    %c0_i32_1 = arith.constant 0 : i32
    return %c0_i32, %c0_i32_0 : i32, i32
  }
  func.func @transform_3(%arg0: i32) -> (i32, i32) {
    %c0_i32 = arith.constant 0 : i32
    %c0_i32_0 = arith.constant 0 : i32
    %c0_i32_1 = arith.constant 0 : i32
    return %c0_i32, %c0_i32_0 : i32, i32
  }
  func.func @transform_4(%arg0: i32) -> (i32, i32) {
    %c0_i32 = arith.constant 0 : i32
    %c0_i32_0 = arith.constant 0 : i32
    %c0_i32_1 = arith.constant 0 : i32
    return %c0_i32, %c0_i32_0 : i32, i32
  }
  func.func @transform_5(%arg0: i32) -> (i32, i32) {
    %c0_i32 = arith.constant 0 : i32
    %c0_i32_0 = arith.constant 0 : i32
    %c0_i32_1 = arith.constant 0 : i32
    return %c0_i32, %c0_i32_0 : i32, i32
  }
  func.func @transform_6(%arg0: i32) -> (i32, i32) {
    %c0_i32 = arith.constant 0 : i32
    %c0_i32_0 = arith.constant 0 : i32
    %c0_i32_1 = arith.constant 0 : i32
    return %c0_i32, %c0_i32_0 : i32, i32
  }
  func.func @transform_7(%arg0: i32) -> (i32, i32) {
    %c0_i32 = arith.constant 0 : i32
    %c0_i32_0 = arith.constant 0 : i32
    %c0_i32_1 = arith.constant 0 : i32
    return %c0_i32, %c0_i32_0 : i32, i32
  }
  func.func @transform_8(%arg0: i32) -> (i32, i32) {
    %c0_i32 = arith.constant 0 : i32
    %c0_i32_0 = arith.constant 0 : i32
    %c0_i32_1 = arith.constant 0 : i32
    return %c0_i32, %c0_i32_0 : i32, i32
  }
  func.func @transform_9(%arg0: i32) -> (i32, i32) {
    %c0_i32 = arith.constant 0 : i32
    %c0_i32_0 = arith.constant 0 : i32
    return %c0_i32, %arg0 : i32, i32
  }
}

</mosaic_0001>

<bundles_post_ra>
// kernel: soft_q_forward.1
= control target key start
LH: loop header
LB: loop body
LE: loop exit
PB: predicated region body
PF: predicated region fallthrough
CT: control target
= control target key end

     0   :  { %15 = vsyncpa [#allocation4], 0  ;;  %s526_s0 = inlined_call_operand.hbm [shape: f32[8,24], index: 0, kind: input, shape index: {}]   ;;  %s527_s1 = inlined_call_operand.hbm [shape: f32[8,8], index: 1, kind: input, shape index: {}]   ;;  %s528_s2 = inlined_call_operand.hbm [shape: bf16[24,32], index: 2, kind: input, shape index: {}]   ;;  %s529_s3 = inlined_call_operand.vmem [shape: bf16[8,32], index: 3, kind: input, shape index: {}]   ;;  %s530_s4 = inlined_call_operand.vmem [shape: f32[1,32], index: 4, kind: input, shape index: {}]   ;;  %s531_s5 = inlined_call_operand.hbm [shape: bf16[32,32], index: 5, kind: input, shape index: {}]   ;;  %s532_s6 = inlined_call_operand.hbm [shape: f32[1,32], index: 6, kind: input, shape index: {}]   ;;  %s533_s7 = inlined_call_operand.vmem [shape: f32[1,32], index: 7, kind: input, shape index: {}]   ;;  %s534_s8 = inlined_call_operand.<no memory space> [shape: f32[1,1], index: 8, kind: input, shape index: {}]   ;;  %s535_s9 = inlined_call_operand.hbm [shape: f32[1,8], index: 9, kind: output, shape index: {}]  }
   0x1   :  { %16 = vsyncpa [#allocation7], 0 }
   0x2   :  { %17 = vsyncpa [#allocation10], 0  ;;  %s35_s11 = sshll.u32 %s527_s1, 4  ;;  %s36_s11 = int_to_ptr.hbm [resolvable:$true] %s35_s11 }
   0x3   :  { %18 = vsyncpa [#allocation5], 0  ;;  %s436_s12 = smov [#allocation6]   ;;  %s62_s16 = sshll.u32 %s531_s5, 4  ;;  %s63_s16 = int_to_ptr.hbm [resolvable:$true] %s62_s16 }
   0x4   :  { %s37_s13 = sshll.u32 %s436_s12, 4  ;;  %s437_s17 = smov [#allocation9]   ;;  %s38_s13 = int_to_ptr.vmem [resolvable:$true] %s37_s13 }
   0x5   :  { %40 = dma.hbm_to_vmem [thread:$0]  %s36_s11, 128, %s38_s13, [#allocation7]  }
   0x6   :  { %s64_s18 = sshll.u32 %s437_s17, 4  ;;  %s24_s21 = sshll.u32 %s526_s0, 4  ;;  %s65_s18 = int_to_ptr.vmem [resolvable:$true] %s64_s18  ;;  %s25_s21 = int_to_ptr.hbm [resolvable:$true] %s24_s21 }
   0x7   :  { %s438_s1 = smov 64   ;;  %s439_s22 = smov 4  }
   0x8   :  { %70 = dma.hbm_to_vmem [thread:$0]  %s63_s16, 256, %s65_s18, [#allocation10], %s438_s1, %s438_s1, %s439_s22  }
   0x9   :  { %s45_s25 = sshll.u32 %s528_s2, 4  ;;  %s440_s26 = smov [#allocation3]   ;;  %s46_s25 = int_to_ptr.hbm [resolvable:$true] %s45_s25 }
   0xa   :  { %s26_s27 = sshll.u32 %s440_s26, 4  ;;  %s441_s5 = smov [#allocation8]   ;;  %s27_s27 = int_to_ptr.vmem [resolvable:$true] %s26_s27 }
   0xb   :  { %29 = dma.hbm_to_vmem [thread:$0]  %s25_s21, 128, %s27_s27, [#allocation4]  }
   0xc   :  { %s47_s28 = sshll.u32 %s441_s5, 4  ;;  %s76_s0 = sshll.u32 %s532_s6, 4  ;;  %s48_s28 = int_to_ptr.vmem [resolvable:$true] %s47_s28  ;;  %s77_s0 = int_to_ptr.hbm [resolvable:$true] %s76_s0 }
   0xd   :  { %53 = dma.hbm_to_vmem [thread:$0]  %s46_s25, 192, %s48_s28, [#allocation7], %s438_s1, %s438_s1, %s439_s22  }
   0xe   :  { %s442_s10 = smov [#allocation11]  }
   0xf   :  { %s78_s11 = sshll.u32 %s442_s10, 4  ;;  %s79_s11 = int_to_ptr.vmem [resolvable:$true] %s78_s11 }
  0x10   :  { %81 = dma.hbm_to_vmem [thread:$0]  %s77_s0, 16, %s79_s11, [#allocation10]  }
  0x11   :  { %428 = dma.done.wait [#allocation4], 128  }
  0x12   :  { %429 = vsyncadd [#allocation4], 4294967168 }
  0x13   :  { %430 = dma.done.wait [#allocation7], 320  }
  0x14   :  { %431 = vsyncadd [#allocation7], 4294966976 }
  0x15   :  { %432 = dma.done.wait [#allocation10], 272  }
  0x16   :  { %433 = vsyncadd [#allocation10], 4294967024  ;;  %vm119_vm0 = vcmask 1043456   ;;  %v114_v0 = vld [vmem:[%s529_s3] sm:$0xf]  ;;  %v109_v1 = vld [vmem:[#allocation6] sm:$0xff]  ;;  %v218_v30 = vlaneseq  ;;  %v232_v41 = vstv %s534_s8 }
  0x17   :  { %v113_v2 = vld [vmem:[#allocation8 + $0x8] sm:$0xf]  ;;  %v121_v3 = vsel %vm119_vm0, %v114_v0, 0  ;;  %v110_v4 = vpack.c.bf16 %v109_v1, %v109_v1  ;;  %vm115_vm1 = vcmask 64512   ;;  %v270_v8 = vld [vmem:[#allocation8] sm:$0xff]  ;;  %v107_v9 = vld [vmem:[#allocation3] sm:$0xff] }
  0x18   :  { %v141_v5 = vunpack.c.l.b16 %v113_v2  ;;  %130 = vmatpush.bf16.msra.mxu0 %v121_v3  ;;  %v108_v10 = vpack.c.bf16 %v107_v9, %v107_v9  ;;  %vm145_vm2 = vcmask 195584   ;;  %v272_v11 = vld [vmem:[#allocation9 + $0x8] sm:$0xff]  ;;  %v271_v12 = vld [vmem:[#allocation9] sm:$0xff]  ;;  %vm192_vm3 = vcmask 261120   ;;  %v282_v22 = vld [vmem:[#allocation11] ss:$0 sm:$0xff] }
  0x19   :  { %202 = vmatpush.bf16.msra.mxu2 %v272_v11  ;;  %v281_v14 = vld [vmem:[%s530_s4] ss:$0 sm:$0xff]  ;;  %v219_v31 = vshrl.u32 %v218_v30, 7  ;;  %v221_v32 = vand.u32 127, %v218_v30  ;;  %s443_s15 = smov [#allocation12]   ;;  %s243_s19 = sshll.u32 %s535_s9, 4  ;;  %s244_s19 = int_to_ptr.hbm [resolvable:$true] %s243_s19 }
  0x1a   :  { %v143_v6 = vpack.c.b16 %v141_v5, %v141_v5  ;;  %v283_v25 = vld [vmem:[%s533_s7] ss:$0 sm:$0xff]  ;;  %s241_s16 = sshll.u32 %s443_s15, 4  ;;  %vm234_vm5 = vcmask 57344   ;;  %s242_s16 = int_to_ptr.vmem [resolvable:$true] %s241_s16 }
  0x1b   :  { %255 = vmatmul.msk.bf16.vlgmr.msra.gmra.mxu0 %vm115_vm1, %v110_v4  ;;  %vm222_vm4 = vcmp.eq.s32.totalorder %v219_v31, %v221_v32 }
  0x1c   :  { %v150_v7 = vsel %vm119_vm0, %v143_v6, 0 }
  0x1d   :  { %158 = vmatpush.bf16.msra.mxu1 %v150_v7  ;;  %203 = vmatpush.bf16.msra.mxu2 %v271_v12 }
  0x21   :  { %159 = vmatpush.bf16.msra.mxu1 %v270_v8 }
  0x24   :  { %260 = vmatmul.msk.bf16.vlgmr.msra.gmra.mxu1 %vm145_vm2, %v108_v10 }
  0x98   :  { %v132_v13 = vpop.f32.mrf.mxu0 }
  0xa0   :  { %v134_v15 = vpop.f32.mrf.mxu0 }
  0xa1   :  { %v161_v16 = vpop.f32.mrf.mxu1 }
  0xa2   :  { %v162_v17 = vadd.f32 %v161_v16, %v132_v13 }
  0xa4   :  { %v169_v18 = vadd.f32 %v281_v14, %v162_v17 }
  0xa6   :  { %v170_v19 = vmax.f32 %v169_v18, 0.0 }
  0xa8   :  { %v171_v20 = vpack.c.bf16 %v170_v19, %v170_v19 }
  0xa9   :  { %v163_v21 = vpop.f32.mrf.mxu1 }
  0xaa   :  { %269 = vmatmul.msk.bf16.vlgmr.msra.gmra.mxu2 %vm192_vm3, %v171_v20 }
 0x12d   :  { %v205_v23 = vpop.f32.mrf.mxu2 }
 0x12e   :  { %v206_v24 = vadd.f32 %v282_v22, %v205_v23 }
 0x130   :  { %v209_v26 = vmax.f32 %v206_v24, 0.0 }
 0x132   :  { %v214_v27 = vmul.f32 %v283_v25, %v209_v26 }
 0x134   :  { %v215_v28 = vsel %vm192_vm3, %v214_v27, 0.0 }
 0x135   :  { %v207_v29 = vpop.f32.mrf.mxu2  ;;  %216 = vadd.xlane.f32.xlu0 %v215_v28 }
 0x1a8   :  { %v217_v33 = vpop.xlane.xlu0 %216 }
 0x1a9   :  { %v223_v34 = vsel %vm222_vm4, %v217_v33, 0.0 }
 0x1aa   :  { %v224_v35 = vsel %vm115_vm1, %v223_v34, 0.0 }
 0x1ab   :  { %v225_v36 = vrot.slane %v224_v35, 4 }
 0x1ad   :  { %v226_v37 = vadd.f32 %v225_v36, %v224_v35 }
 0x1af   :  { %v227_v38 = vrot.slane %v226_v37, 2 }
 0x1b1   :  { %v228_v39 = vadd.f32 %v227_v38, %v226_v37 }
 0x1b3   :  { %v229_v40 = vrot.slane %v228_v39, 1 }
 0x1b5   :  { %v230_v42 = vadd.f32 %v229_v40, %v228_v39 }
 0x1b7   :  { %v233_v43 = vadd.f32 %v232_v41, %v230_v42 }
 0x1b9   :  { %235 = vst.msk [vmem:[#allocation12] sm:$0x1] %vm234_vm5, %v233_v43 }
 0x1ba   :  { %246 = dma.vmem_to_hbm [thread:$0]  %s242_s16, 16, %s244_s19, [#allocation5]  }
 0x1bb   :  { %434 = dma.done.wait [#allocation5], 16  }
 0x1bc   :  { %435 = vsyncadd [#allocation5], 4294967280 }
 0x1bd   :  { %251 = vsyncpa [#allocation4], 1 }
 0x1be   :  { %252 = vsyncpa [#allocation7], 1 }
 0x1bf   :  { %253 = vsyncpa [#allocation10], 1 }
 0x1c0   :  { %254 = vsyncpa [#allocation5], 1 }

</bundles_post_ra>
